<compile_context>
chip_gen: v7x
topology: tpu7x:2x2x1
jax: 0.10.0
libtpu: 0.0.40
codegen_flags: <defaults>
</compile_context>

<pallas_src>
import functools
import math

import jax
import jax.numpy as jnp
from jax.experimental import pallas as pl
from jax.experimental.pallas import tpu as pltpu

HIDDEN = 256
LANE = 128
BATCH_ALIGN = 16  # sublane-pair aligned -> safe for bf16-packed output tiles


def _round_up(x, m):
    return ((x + m - 1) // m) * m


def _actor_kernel(x_ref, w1_ref, b1_ref, w2_ref, b2_ref, w3_ref, b3_ref,
                  o_ref, *, max_action):
    # Layer 1: Linear(state_dim -> 256) + ReLU   (bf16 MXU, f32 accumulate)
    x = x_ref[...].astype(jnp.bfloat16)
    h1 = jnp.dot(x, w1_ref[...], preferred_element_type=jnp.float32) + b1_ref[...]
    # Carry the activation in bf16: values are truncated to bf16 before the
    # next matmul anyway, and bf16 halves spill vst/vld traffic at large tiles.
    h1 = jnp.maximum(h1, 0.0).astype(jnp.bfloat16)
    # Layer 2: Linear(256 -> 256) + ReLU
    h2 = jnp.dot(h1, w2_ref[...], preferred_element_type=jnp.float32) + b2_ref[...]
    h2 = jnp.maximum(h2, 0.0).astype(jnp.bfloat16)
    # Layer 3: Linear(256 -> action_dim_padded) + Tanh, scaled by max_action
    h3 = jnp.dot(h2, w3_ref[...], preferred_element_type=jnp.float32) + b3_ref[...]
    o_ref[...] = (max_action * jnp.tanh(h3)).astype(o_ref.dtype)


def prepare_actor_params(params):
    """One-time weight preparation (hoisted out of the per-forward hot path):
    cast weights to bf16 and lane-pad the last layer to a 128-wide output."""
    w1, b1, w2, b2, w3, b3 = params
    hidden, action_dim = w3.shape
    out_pad = _round_up(max(action_dim, LANE), LANE)
    w3p = jnp.zeros((hidden, out_pad), jnp.float32).at[:, :action_dim].set(w3)
    b3p = jnp.zeros((1, out_pad), jnp.float32).at[:, :action_dim].set(b3)
    return {
        "w1": w1.astype(jnp.bfloat16), "b1": b1,
        "w2": w2.astype(jnp.bfloat16), "b2": b2,
        "w3": w3p.astype(jnp.bfloat16), "b3": b3p,
        "action_dim": int(action_dim), "out_pad": int(out_pad),
    }


def _choose_tile_b(batch):
    """Aim for >= 4 grid steps (v7x megacore sharding + per-core pipelining),
    keep tiles >= 128 rows to amortize per-step overhead, cap at 2048 rows."""
    b_aln = _round_up(max(batch, 1), BATCH_ALIGN)
    tile = _round_up(pl.cdiv(b_aln, 4), BATCH_ALIGN)
    tile = min(max(tile, 128), 2048, b_aln)
    return max(tile, BATCH_ALIGN)


def actor_forward(state, prepared, max_action, *, tile_b=None):
    """state: (B, state_dim) f32.  `prepared` = prepare_actor_params(params).
    Returns (B, action_dim) f32."""
    B, state_dim = state.shape
    hidden = prepared["w1"].shape[1]
    action_dim = prepared["action_dim"]
    out_pad = prepared["out_pad"]

    # --- Batch tiling: 16-row aligned tiles, batch padded to the tile. ------
    if tile_b is None:
        tile_b = _choose_tile_b(B)
    tile_b = max(BATCH_ALIGN, _round_up(min(tile_b, 2048), BATCH_ALIGN))
    b_pad = _round_up(B, tile_b)
    if b_pad != B:
        state = jnp.pad(state, ((0, b_pad - B), (0, 0)))
    grid = (b_pad // tile_b,)

    kernel = functools.partial(_actor_kernel, max_action=float(max_action))

    # Weights/biases: full-array block, constant index_map -> VMEM-resident.
    def const_spec(arr):
        return pl.BlockSpec(arr.shape, lambda i: (0, 0))

    in_specs = [
        pl.BlockSpec((tile_b, state_dim), lambda i: (i, 0)),   # state tile
        const_spec(prepared["w1"]), const_spec(prepared["b1"]),
        const_spec(prepared["w2"]), const_spec(prepared["b2"]),
        const_spec(prepared["w3"]), const_spec(prepared["b3"]),
    ]
    out_spec = pl.BlockSpec((tile_b, out_pad), lambda i: (i, 0))

    flops = 2 * b_pad * (state_dim * hidden + hidden * hidden + hidden * out_pad)
    bytes_accessed = (
        b_pad * state_dim * 4                                            # state f32
        + (state_dim * hidden + hidden * hidden + hidden * out_pad) * 2  # bf16 W
        + (2 * hidden + out_pad) * 4                                     # f32 biases
        + b_pad * out_pad * 2                                            # bf16 output
    )

    out = pl.pallas_call(
        kernel,
        out_shape=jax.ShapeDtypeStruct((b_pad, out_pad), jnp.bfloat16),
        grid=grid,
        in_specs=in_specs,
        out_specs=out_spec,
        compiler_params=pltpu.CompilerParams(
            dimension_semantics=("parallel",),
            # 32 MiB: plenty for tile_b=2048 (~8-10 MiB), and safe on v7x's
            # 64 MiB physical VMEM when both TensorCores run the sharded grid.
            vmem_limit_bytes=32 * 1024 * 1024,
        ),
        cost_estimate=pl.CostEstimate(
            flops=flops,
            transcendentals=b_pad * out_pad,
            bytes_accessed=bytes_accessed,
        ),
    )(state, prepared["w1"], prepared["b1"], prepared["w2"], prepared["b2"],
      prepared["w3"], prepared["b3"])

    return out[:B, :action_dim].astype(jnp.float32)


def init_actor_params(key, state_dim, action_dim):
    """Xavier-normal weights with gain=sqrt(2) (relu gain), zero biases —
    matching the PyTorch __init__.  Weights stored as (in, out)."""
    gain = math.sqrt(2.0)  # nn.init.calculate_gain('relu')
    k1, k2, k3 = jax.random.split(key, 3)

    def xavier(k, fan_in, fan_out):
        std = gain * math.sqrt(2.0 / (fan_in + fan_out))
        return (std * jax.random.normal(k, (fan_in, fan_out))).astype(jnp.float32)

    w1 = xavier(k1, state_dim, HIDDEN)
    b1 = jnp.zeros((1, HIDDEN), jnp.float32)
    w2 = xavier(k2, HIDDEN, HIDDEN)
    b2 = jnp.zeros((1, HIDDEN), jnp.float32)
    w3 = xavier(k3, HIDDEN, action_dim)
    b3 = jnp.zeros((1, action_dim), jnp.float32)
    return (w1, b1, w2, b2, w3, b3)


if __name__ == "__main__":
    key = jax.random.PRNGKey(0)
    k_param, k_state = jax.random.split(key)

    batch = 2
    state_dim = 16
    action_dim = 8
    max_action = 1.0

    params = init_actor_params(k_param, state_dim, action_dim)
    # Weight prep is done ONCE, outside the per-forward hot path.
    prepared = prepare_actor_params(params)
    state = jax.random.normal(k_state, (batch, state_dim), dtype=jnp.float32)

    out = actor_forward(state, prepared, max_action)
    out = jax.block_until_ready(out)
    assert out.shape == (batch, action_dim)

    w1, b1, w2, b2, w3, b3 = params

    # Reference with matching bf16-matmul / f32-accumulate numerics
    # (kernel additionally rounds the final tanh output to bf16).
    bf16 = jnp.bfloat16
    r = jnp.maximum(jnp.dot(state.astype(bf16), w1.astype(bf16),
                            preferred_element_type=jnp.float32) + b1, 0.0)
    r = jnp.maximum(jnp.dot(r.astype(bf16), w2.astype(bf16),
                            preferred_element_type=jnp.float32) + b2, 0.0)
    ref_bf16 = max_action * jnp.tanh(
        jnp.dot(r.astype(bf16), w3.astype(bf16),
                preferred_element_type=jnp.float32) + b3)
    assert jnp.allclose(out, ref_bf16, atol=1e-2, rtol=1e-2)

    # Looser sanity check against the full-f32 reference (bf16 operand error).
    ref_f32 = jnp.maximum(state @ w1 + b1, 0.0)
    ref_f32 = jnp.maximum(ref_f32 @ w2 + b2, 0.0)
    ref_f32 = max_action * jnp.tanh(ref_f32 @ w3 + b3)
    assert jnp.allclose(out, ref_f32, atol=3e-2, rtol=3e-2)

    print("KERNEL_OK")
</pallas_src>

<mosaic_0001>
module attributes {stable_mosaic.version = 11 : i64} {
  func.func @_actor_kernel(%arg0: i32, %arg1: memref<16x16xf32, #tpu.memory_space<vmem>>, %arg2: memref<16x256xbf16, #tpu.memory_space<vmem>>, %arg3: memref<1x256xf32, #tpu.memory_space<vmem>>, %arg4: memref<256x256xbf16, #tpu.memory_space<vmem>>, %arg5: memref<1x256xf32, #tpu.memory_space<vmem>>, %arg6: memref<256x128xbf16, #tpu.memory_space<vmem>>, %arg7: memref<1x128xf32, #tpu.memory_space<vmem>>, %arg8: memref<16x128xbf16, #tpu.memory_space<vmem>>) attributes {dimension_semantics = [#tpu.dimension_semantics<parallel>], iteration_bounds = array<i64: 1>, scalar_prefetch = 0 : i64, scratch_operands = 0 : i64, tpu.core_type = #tpu.core_type<tc>, window_params = [{transform_indices = @transform_0, window_bounds = array<i64: 16, 16>}, {pipeline_mode = #tpu.pipeline_mode<synchronous>, transform_indices = @transform_1, window_bounds = array<i64: 16, 256>}, {pipeline_mode = #tpu.pipeline_mode<synchronous>, transform_indices = @transform_2, window_bounds = array<i64: 1, 256>}, {pipeline_mode = #tpu.pipeline_mode<synchronous>, transform_indices = @transform_3, window_bounds = array<i64: 256, 256>}, {pipeline_mode = #tpu.pipeline_mode<synchronous>, transform_indices = @transform_4, window_bounds = array<i64: 1, 256>}, {pipeline_mode = #tpu.pipeline_mode<synchronous>, transform_indices = @transform_5, window_bounds = array<i64: 256, 128>}, {pipeline_mode = #tpu.pipeline_mode<synchronous>, transform_indices = @transform_6, window_bounds = array<i64: 1, 128>}, {transform_indices = @transform_7, window_bounds = array<i64: 16, 128>}]} {
    %c0 = arith.constant 0 : index
    %c0_0 = arith.constant 0 : index
    %0 = vector.load %arg1[%c0, %c0_0] : memref<16x16xf32, #tpu.memory_space<vmem>>, vector<16x16xf32>
    %1 = arith.truncf %0 : vector<16x16xf32> to vector<16x16xbf16>
    %c0_1 = arith.constant 0 : index
    %c0_2 = arith.constant 0 : index
    %2 = vector.load %arg2[%c0_1, %c0_2] : memref<16x256xbf16, #tpu.memory_space<vmem>>, vector<16x256xbf16>
    %cst = arith.constant dense<0.000000e+00> : vector<16x256xf32>
    %3 = tpu.matmul %1, %2, %cst {dimension_numbers = #tpu.dot_dimension_numbers<[1], [0], [0], [1], [0, 0, 1, 1], [], []>} : vector<16x16xbf16>, vector<16x256xbf16>, vector<16x256xf32> -> vector<16x256xf32>
    %c0_3 = arith.constant 0 : index
    %c0_4 = arith.constant 0 : index
    %4 = vector.load %arg3[%c0_3, %c0_4] : memref<1x256xf32, #tpu.memory_space<vmem>>, vector<1x256xf32>
    %5 = vector.broadcast %4 : vector<1x256xf32> to vector<16x256xf32>
    %6 = arith.addf %3, %5 : vector<16x256xf32>
    %cst_5 = arith.constant 0.000000e+00 : f32
    %7 = vector.broadcast %cst_5 : f32 to vector<16x256xf32>
    %8 = arith.maximumf %6, %7 : vector<16x256xf32>
    %9 = arith.truncf %8 : vector<16x256xf32> to vector<16x256xbf16>
    %c0_6 = arith.constant 0 : index
    %c0_7 = arith.constant 0 : index
    %10 = vector.load %arg4[%c0_6, %c0_7] : memref<256x256xbf16, #tpu.memory_space<vmem>>, vector<256x256xbf16>
    %cst_8 = arith.constant dense<0.000000e+00> : vector<16x256xf32>
    %11 = tpu.matmul %9, %10, %cst_8 {dimension_numbers = #tpu.dot_dimension_numbers<[1], [0], [0], [1], [0, 0, 1, 1], [], []>} : vector<16x256xbf16>, vector<256x256xbf16>, vector<16x256xf32> -> vector<16x256xf32>
    %c0_9 = arith.constant 0 : index
    %c0_10 = arith.constant 0 : index
    %12 = vector.load %arg5[%c0_9, %c0_10] : memref<1x256xf32, #tpu.memory_space<vmem>>, vector<1x256xf32>
    %13 = vector.broadcast %12 : vector<1x256xf32> to vector<16x256xf32>
    %14 = arith.addf %11, %13 : vector<16x256xf32>
    %cst_11 = arith.constant 0.000000e+00 : f32
    %15 = vector.broadcast %cst_11 : f32 to vector<16x256xf32>
    %16 = arith.maximumf %14, %15 : vector<16x256xf32>
    %17 = arith.truncf %16 : vector<16x256xf32> to vector<16x256xbf16>
    %c0_12 = arith.constant 0 : index
    %c0_13 = arith.constant 0 : index
    %18 = vector.load %arg6[%c0_12, %c0_13] : memref<256x128xbf16, #tpu.memory_space<vmem>>, vector<256x128xbf16>
    %cst_14 = arith.constant dense<0.000000e+00> : vector<16x128xf32>
    %19 = tpu.matmul %17, %18, %cst_14 {dimension_numbers = #tpu.dot_dimension_numbers<[1], [0], [0], [1], [0, 0, 1, 1], [], []>} : vector<16x256xbf16>, vector<256x128xbf16>, vector<16x128xf32> -> vector<16x128xf32>
    %c0_15 = arith.constant 0 : index
    %c0_16 = arith.constant 0 : index
    %20 = vector.load %arg7[%c0_15, %c0_16] : memref<1x128xf32, #tpu.memory_space<vmem>>, vector<1x128xf32>
    %21 = vector.broadcast %20 : vector<1x128xf32> to vector<16x128xf32>
    %22 = arith.addf %19, %21 : vector<16x128xf32>
    %23 = math.tanh %22 : vector<16x128xf32>
    %cst_17 = arith.constant 1.000000e+00 : f32
    %24 = vector.broadcast %cst_17 : f32 to vector<16x128xf32>
    %25 = arith.mulf %24, %23 : vector<16x128xf32>
    %26 = arith.truncf %25 : vector<16x128xf32> to vector<16x128xbf16>
    %c0_18 = arith.constant 0 : index
    %c0_19 = arith.constant 0 : index
    %27 = vector.load %arg8[%c0_18, %c0_19] : memref<16x128xbf16, #tpu.memory_space<vmem>>, vector<16x128xbf16>
    tpu.vector_store %arg8[%c0_18, %c0_19], %26 {strides = array<i32>} : memref<16x128xbf16, #tpu.memory_space<vmem>>, vector<16x128xbf16>,
    return
  }
  func.func @transform_0(%arg0: i32) -> (i32, i32) {
    %c0_i32 = arith.constant 0 : i32
    %c0_i32_0 = arith.constant 0 : i32
    return %arg0, %c0_i32 : i32, i32
  }
  func.func @transform_1(%arg0: i32) -> (i32, i32) {
    %c0_i32 = arith.constant 0 : i32
    %c0_i32_0 = arith.constant 0 : i32
    %c0_i32_1 = arith.constant 0 : i32
    return %c0_i32, %c0_i32_0 : i32, i32
  }
  func.func @transform_2(%arg0: i32) -> (i32, i32) {
    %c0_i32 = arith.constant 0 : i32
    %c0_i32_0 = arith.constant 0 : i32
    %c0_i32_1 = arith.constant 0 : i32
    return %c0_i32, %c0_i32_0 : i32, i32
  }
  func.func @transform_3(%arg0: i32) -> (i32, i32) {
    %c0_i32 = arith.constant 0 : i32
    %c0_i32_0 = arith.constant 0 : i32
    %c0_i32_1 = arith.constant 0 : i32
    return %c0_i32, %c0_i32_0 : i32, i32
  }
  func.func @transform_4(%arg0: i32) -> (i32, i32) {
    %c0_i32 = arith.constant 0 : i32
    %c0_i32_0 = arith.constant 0 : i32
    %c0_i32_1 = arith.constant 0 : i32
    return %c0_i32, %c0_i32_0 : i32, i32
  }
  func.func @transform_5(%arg0: i32) -> (i32, i32) {
    %c0_i32 = arith.constant 0 : i32
    %c0_i32_0 = arith.constant 0 : i32
    %c0_i32_1 = arith.constant 0 : i32
    return %c0_i32, %c0_i32_0 : i32, i32
  }
  func.func @transform_6(%arg0: i32) -> (i32, i32) {
    %c0_i32 = arith.constant 0 : i32
    %c0_i32_0 = arith.constant 0 : i32
    %c0_i32_1 = arith.constant 0 : i32
    return %c0_i32, %c0_i32_0 : i32, i32
  }
  func.func @transform_7(%arg0: i32) -> (i32, i32) {
    %c0_i32 = arith.constant 0 : i32
    %c0_i32_0 = arith.constant 0 : i32
    return %arg0, %c0_i32 : i32, i32
  }
}

</mosaic_0001>

<bundles_post_ra>
// kernel: tpu_custom_call.1
= control target key start
LH: loop header
LB: loop body
LE: loop exit
PB: predicated region body
PF: predicated region fallthrough
CT: control target
= control target key end

     0   :  { %12 = vsyncpa [#allocation3], 0  ;;  %s1053_s0 = inlined_call_operand.hbm [shape: f32[16,16], index: 0, kind: input, shape index: {}]   ;;  %s1054_s1 = inlined_call_operand.hbm [shape: bf16[16,256], index: 1, kind: input, shape index: {}]   ;;  %s1055_s2 = inlined_call_operand.vmem [shape: f32[1,256], index: 2, kind: input, shape index: {}]   ;;  %s1056_s3 = inlined_call_operand.hbm [shape: bf16[256,256], index: 3, kind: input, shape index: {}]   ;;  %s1057_s4 = inlined_call_operand.vmem [shape: f32[1,256], index: 4, kind: input, shape index: {}]   ;;  %s1058_s5 = inlined_call_operand.hbm [shape: bf16[256,128], index: 5, kind: input, shape index: {}]   ;;  %s1059_s6 = inlined_call_operand.vmem [shape: f32[1,128], index: 6, kind: input, shape index: {}]   ;;  %s1060_s7 = inlined_call_operand.hbm [shape: bf16[16,128], index: 7, kind: output, shape index: {}]  }
   0x1   :  { %13 = vsyncpa [#allocation6], 0 }
   0x2   :  { %14 = vsyncpa [#allocation9], 0 }
   0x3   :  { %15 = vsyncpa [#allocation4], 0  ;;  %s905_s24 = smov [#allocation5]   ;;  %s906_s26 = smov [#allocation2]  }
   0x4   :  { %s33_s25 = sshll.u32 %s905_s24, 4  ;;  %s21_s27 = sshll.u32 %s906_s26, 4  ;;  %s34_s25 = int_to_ptr.vmem [resolvable:$true] %s33_s25  ;;  %s955_s27 = int_to_ptr.vmem [resolvable:$true] %s21_s27 }
   0x5   :  { %s787_s30 = scalar_lea.hbm %s1054_s1, 256 }
   0x6   :  { %p788_p0 = scmp.ne.s32.totalorder %s1054_s1, %s787_s30  ;;  %p791_p1 = scmp.lt.u32.totalorder %s787_s30, %s1054_s1 }
   0x8   :  { %p793_p2 = pnand %p791_p1, %p788_p0 }
   0xa   :  { %796 = shalt.err (!%p793_p2)
}
   0xb   :  { %s797_s12 = scalar_lea.vmem %s34_s25, 256  ;;  %p802_p4 = scmp.lt.s32.totalorder %s34_s25, %s34_s25 }
   0xc   :  { %p798_p3 = scmp.ne.s32.totalorder %s34_s25, %s797_s12  ;;  %p803_p5 = scmp.lt.s32.totalorder %s797_s12, %s797_s12 }
   0xe   :  { %p804_p6 = por %p803_p5, %p802_p4 }
  0x10   :  { %p805_p7 = pnand %p804_p6, %p798_p3 }
  0x12   :  { %808 = shalt.err (!%p805_p7)
}
  0x13   :  { %s907_s13 = smov 128   ;;  %s908_s14 = smov 8  }
  0x14   :  { %39 = dma.hbm_to_vmem [thread:$0]  %s1054_s1, 256, %s34_s25, [#allocation6], %s907_s13, %s907_s13, %s908_s14  }
  0x15   :  { %s809_s19 = scalar_lea.hbm %s1053_s0, 256 }
  0x16   :  { %p810_p8 = scmp.ne.s32.totalorder %s1053_s0, %s809_s19  ;;  %p813_p9 = scmp.lt.u32.totalorder %s809_s19, %s1053_s0 }
  0x18   :  { %p815_p10 = pnand %p813_p9, %p810_p8 }
  0x1a   :  { %818 = shalt.err (!%p815_p10)
}
  0x1b   :  { %s819_s24 = scalar_lea.vmem %s955_s27, 256  ;;  %p824_p12 = scmp.lt.s32.totalorder %s955_s27, %s955_s27 }
  0x1c   :  { %p820_p11 = scmp.ne.s32.totalorder %s955_s27, %s819_s24  ;;  %p825_p13 = scmp.lt.s32.totalorder %s819_s24, %s819_s24 }
  0x1e   :  { %p826_p0 = por %p825_p13, %p824_p12 }
  0x20   :  { %p827_p1 = pnand %p826_p0, %p820_p11 }
  0x22   :  { %830 = shalt.err (!%p827_p1)
}
  0x23   :  { %27 = dma.hbm_to_vmem [thread:$0]  %s1053_s0, 256, %s955_s27, [#allocation3], %s907_s13, %s907_s13, %s908_s14  }
  0x24   :  { %s909_s26 = smov [#allocation7]   ;;  %s910_s29 = smov [#allocation8]  }
  0x25   :  { %s47_s28 = sshll.u32 %s909_s26, 4  ;;  %s61_s30 = sshll.u32 %s910_s29, 4  ;;  %s48_s28 = int_to_ptr.vmem [resolvable:$true] %s47_s28  ;;  %s992_s30 = int_to_ptr.vmem [resolvable:$true] %s61_s30 }
  0x26   :  { %s831_s10 = scalar_lea.hbm %s1056_s3, 4096 }
  0x27   :  { %p832_p2 = scmp.ne.s32.totalorder %s1056_s3, %s831_s10  ;;  %p835_p3 = scmp.lt.u32.totalorder %s831_s10, %s1056_s3 }
  0x29   :  { %p837_p4 = pnand %p835_p3, %p832_p2 }
  0x2b   :  { %840 = shalt.err (!%p837_p4)
}
  0x2c   :  { %s841_s0 = scalar_lea.vmem %s48_s28, 4096  ;;  %p846_p6 = scmp.lt.s32.totalorder %s48_s28, %s48_s28 }
  0x2d   :  { %p842_p5 = scmp.ne.s32.totalorder %s48_s28, %s841_s0  ;;  %p847_p7 = scmp.lt.s32.totalorder %s841_s0, %s841_s0 }
  0x2f   :  { %p848_p8 = por %p847_p7, %p846_p6 }
  0x31   :  { %p849_p9 = pnand %p848_p8, %p842_p5 }
  0x33   :  { %852 = shalt.err (!%p849_p9)
}
  0x34   :  { %53 = dma.hbm_to_vmem [thread:$0]  %s1056_s3, 4096, %s48_s28, [#allocation6], %s907_s13, %s907_s13, %s908_s14  }
  0x35   :  { %s853_s20 = scalar_lea.hbm %s1058_s5, 2048 }
  0x36   :  { %p854_p10 = scmp.ne.s32.totalorder %s1058_s5, %s853_s20  ;;  %p857_p11 = scmp.lt.u32.totalorder %s853_s20, %s1058_s5 }
  0x38   :  { %p859_p12 = pnand %p857_p11, %p854_p10 }
  0x3a   :  { %862 = shalt.err (!%p859_p12)
}
  0x3b   :  { %s863_s1 = scalar_lea.vmem %s992_s30, 2048  ;;  %p868_p0 = scmp.lt.s32.totalorder %s992_s30, %s992_s30 }
  0x3c   :  { %p864_p13 = scmp.ne.s32.totalorder %s992_s30, %s863_s1  ;;  %p869_p1 = scmp.lt.s32.totalorder %s863_s1, %s863_s1 }
  0x3e   :  { %p870_p2 = por %p869_p1, %p868_p0 }
  0x40   :  { %p871_p3 = pnand %p870_p2, %p864_p13 }
  0x42   :  { %874 = shalt.err (!%p871_p3)
}
  0x43   :  { %s911_s3 = smov 64   ;;  %s912_s13 = smov 4  }
  0x44   :  { %67 = dma.hbm_to_vmem [thread:$0]  %s1058_s5, 2048, %s992_s30, [#allocation9], %s911_s3, %s911_s3, %s912_s13  }
  0x45   :  { %897 = dma.done.wait [#allocation3], 256  }
  0x46   :  { %898 = vsyncadd [#allocation3], 4294967040 }
  0x47   :  { %899 = dma.done.wait [#allocation6], 4352  }
  0x48   :  { %900 = vsyncadd [#allocation6], 4294962944 }
  0x49   :  { %901 = dma.done.wait [#allocation9], 2048  }
  0x4a   :  { %902 = vsyncadd [#allocation9], 4294965248  ;;  %v913_v0 = vmov 0   ;;  %v716_v1 = vld [vmem:[#allocation5 + $0x4] ss:$8 sps:$4 sm:$0xff]   ;;  %v83_v3 = vld [vmem:[#allocation2] sm:$0xff]  ;;  %v90_v49 = vlaneseq }
  0x4b   :  { %146 = vmatprep.mubr.bf16.mxu0 %v913_v0  ;;  %v718_v2 = vld [vmem:[#allocation5] ss:$8 sps:$4 sm:$0xff]   ;;  %v84_v4 = vld [vmem:[#allocation2 + $0x8] sm:$0xff]  ;;  %114 = vmatprep.subr.bf16.mxu0 %v716_v1  ;;  %vm110_vm0 = vcmask 130048   ;;  %v722_v8 = vld [vmem:[#allocation7 + $0x14] ss:$8 sps:$4 sm:$0xff]  }
  0x4c   :  { %v85_v5 = vpack.c.bf16 %v84_v4, %v83_v3  ;;  %v719_v6 = vld [vmem:[#allocation7 + $0x4] ss:$8 sps:$4 sm:$0xff]   ;;  %115 = vmatpush1.bf16.msra.mxu0 %v718_v2  ;;  %v721_v7 = vld [vmem:[#allocation7] ss:$8 sps:$4 sm:$0xff]   ;;  %v724_v9 = vld [vmem:[#allocation7 + $0x10] ss:$8 sps:$4 sm:$0xff]  }
  0x4d   :  { %367 = vmatprep.subr.bf16.mxu1 %v719_v6  ;;  %v725_v10 = vld [vmem:[#allocation7 + $0x24] ss:$8 sps:$4 sm:$0xff]   ;;  %v727_v11 = vld [vmem:[#allocation7 + $0x20] ss:$8 sps:$4 sm:$0xff]   ;;  %v728_v12 = vld [vmem:[#allocation7 + $0x34] ss:$8 sps:$4 sm:$0xff]  }
  0x4e   :  { %368 = vmatpush1.bf16.msra.mxu1 %v721_v7  ;;  %v730_v13 = vld [vmem:[#allocation7 + $0x30] ss:$8 sps:$4 sm:$0xff]   ;;  %v731_v14 = vld [vmem:[#allocation7 + $0x44] ss:$8 sps:$4 sm:$0xff]   ;;  %v733_v15 = vld [vmem:[#allocation7 + $0x40] ss:$8 sps:$4 sm:$0xff]  }
  0x4f   :  { %625 = vmatmul.mubr.msk.bf16.vlgmr.msra.gmra.mrb[0].mxu0 %vm110_vm0, %v85_v5  ;;  %369 = vmatprep.subr.bf16.mxu1 %v722_v8  ;;  %v734_v16 = vld [vmem:[#allocation7 + $0x54] ss:$8 sps:$4 sm:$0xff]   ;;  %v736_v17 = vld [vmem:[#allocation7 + $0x50] ss:$8 sps:$4 sm:$0xff]   ;;  %v737_v18 = vld [vmem:[#allocation7 + $0x64] ss:$8 sps:$4 sm:$0xff]  }
  0x50   :  { %v739_v19 = vld [vmem:[#allocation7 + $0x60] ss:$8 sps:$4 sm:$0xff]   ;;  %v740_v20 = vld [vmem:[#allocation7 + $0x74] ss:$8 sps:$4 sm:$0xff]   ;;  %v742_v21 = vld [vmem:[#allocation7 + $0x70] ss:$8 sps:$4 sm:$0xff]  }
  0x51   :  { %v743_v22 = vld [vmem:[#allocation7 + $0x84] ss:$8 sps:$4 sm:$0xff]   ;;  %v745_v23 = vld [vmem:[#allocation7 + $0x80] ss:$8 sps:$4 sm:$0xff]   ;;  %v746_v24 = vld [vmem:[#allocation7 + $0x94] ss:$8 sps:$4 sm:$0xff]  }
  0x52   :  { %370 = vmatpush1.bf16.msra.mxu1 %v724_v9  ;;  %v748_v25 = vld [vmem:[#allocation7 + $0x90] ss:$8 sps:$4 sm:$0xff]   ;;  %v749_v26 = vld [vmem:[#allocation7 + $0xa4] ss:$8 sps:$4 sm:$0xff]   ;;  %v751_v27 = vld [vmem:[#allocation7 + $0xa0] ss:$8 sps:$4 sm:$0xff]  }
  0x53   :  { %371 = vmatprep.subr.bf16.mxu1 %v725_v10  ;;  %v752_v28 = vld [vmem:[#allocation7 + $0xb4] ss:$8 sps:$4 sm:$0xff]   ;;  %v754_v29 = vld [vmem:[#allocation7 + $0xb0] ss:$8 sps:$4 sm:$0xff]   ;;  %v755_v30 = vld [vmem:[#allocation7 + $0xc4] ss:$8 sps:$4 sm:$0xff]  }
  0x54   :  { %v757_v31 = vld [vmem:[#allocation7 + $0xc0] ss:$8 sps:$4 sm:$0xff]   ;;  %v758_v32 = vld [vmem:[#allocation7 + $0xd4] ss:$8 sps:$4 sm:$0xff]   ;;  %v760_v33 = vld [vmem:[#allocation7 + $0xd0] ss:$8 sps:$4 sm:$0xff]  }
  0x55   :  { %v761_v34 = vld [vmem:[#allocation7 + $0xe4] ss:$8 sps:$4 sm:$0xff]   ;;  %v763_v35 = vld [vmem:[#allocation7 + $0xe0] ss:$8 sps:$4 sm:$0xff]   ;;  %v764_v36 = vld [vmem:[#allocation7 + $0xf4] ss:$8 sps:$4 sm:$0xff]  }
  0x56   :  { %372 = vmatpush1.bf16.msra.mxu1 %v727_v11  ;;  %v766_v37 = vld [vmem:[#allocation7 + $0xf0] ss:$8 sps:$4 sm:$0xff]   ;;  %v767_v38 = vld [vmem:[#allocation8 + $0x40] sm:$0xff]   ;;  %v769_v40 = vld [vmem:[#allocation8 + $0x48] sm:$0xff]   ;;  %v91_v50 = vshrl.u32 %v90_v49, 7  ;;  %s914_s30 = smov [#allocation10]  }
  0x57   :  { %373 = vmatprep.subr.bf16.mxu1 %v728_v12  ;;  %v768_v39 = vld [vmem:[#allocation8] sm:$0xff]   ;;  %684 = vmatprep.subr.bf16.mxu0 %v767_v38  ;;  %v770_v41 = vld [vmem:[#allocation8 + $0x8] sm:$0xff]   ;;  %v771_v42 = vld [vmem:[#allocation8 + $0x50] sm:$0xff]   ;;  %s609_s8 = sshll.u32 %s914_s30, 4  ;;  %s610_s8 = int_to_ptr.vmem [resolvable:$true] %s609_s8 }
  0x58   :  { %685 = vmatpush3.bf16.msra.mxu0 %v768_v39  ;;  %v772_v43 = vld [vmem:[#allocation8 + $0x10] sm:$0xff]   ;;  %v773_v44 = vld [vmem:[#allocation8 + $0x58] sm:$0xff]   ;;  %v775_v46 = vld [vmem:[#allocation8 + $0x60] sm:$0xff]   ;;  %v92_v51 = vsub.s32 0, %v91_v50  ;;  %v96_v53 = vsub.s32 1, %v91_v50  ;;  %s875_s9 = scalar_lea.vmem %s610_s8, 128  ;;  %p880_p5 = scmp.lt.s32.totalorder %s610_s8, %s610_s8 }
  0x59   :  { %686 = vmatprep.subr.bf16.mxu0 %v769_v40  ;;  %v774_v45 = vld [vmem:[#allocation8 + $0x18] sm:$0xff]   ;;  %v776_v47 = vld [vmem:[#allocation8 + $0x20] sm:$0xff]   ;;  %v777_v48 = vld [vmem:[#allocation8 + $0x68] sm:$0xff]   ;;  %p876_p4 = scmp.ne.s32.totalorder %s610_s8, %s875_s9  ;;  %p881_p6 = scmp.lt.s32.totalorder %s875_s9, %s875_s9 }
  0x5a   :  { %374 = vmatpush1.bf16.msra.mxu1 %v730_v13  ;;  %v88_v52 = vld [vmem:[%s1055_s2] sm:$0x3]  ;;  %v778_v6 = vld [vmem:[#allocation8 + $0x28] sm:$0xff]   ;;  %v779_v7 = vld [vmem:[#allocation8 + $0x70] sm:$0xff]  }
  0x5b   :  { %375 = vmatprep.subr.bf16.mxu1 %v731_v14  ;;  %v93_v54 = vrot.slane %v88_v52, %v92_v51  ;;  %v97_v55 = vrot.slane %v88_v52, %v96_v53  ;;  %v780_v8 = vld [vmem:[#allocation8 + $0x30] sm:$0xff]   ;;  %v781_v9 = vld [vmem:[#allocation8 + $0x78] sm:$0xff]   ;;  %v195_v11 = vld [vmem:[%s1057_s4] sm:$0x3]  ;;  %p882_p7 = por %p881_p6, %p880_p5 }
  0x5c   :  { %687 = vmatpush3.bf16.msra.mxu0 %v770_v41  ;;  %v782_v10 = vld [vmem:[#allocation8 + $0x38] sm:$0xff]   ;;  %v200_v12 = vrot.slane %v195_v11, %v92_v51  ;;  %v204_v13 = vrot.slane %v195_v11, %v96_v53 }
  0x5d   :  { %688 = vmatprep.subr.bf16.mxu0 %v771_v42  ;;  %p883_p8 = pnand %p882_p7, %p876_p4 }
  0x5e   :  { %376 = vmatpush1.bf16.msra.mxu1 %v733_v15 }
  0x5f   :  { %377 = vmatprep.subr.bf16.mxu1 %v734_v16 }
  0x60   :  { %689 = vmatpush3.bf16.msra.mxu0 %v772_v43 }
  0x61   :  { %690 = vmatprep.subr.bf16.mxu0 %v773_v44 }
  0x62   :  { %378 = vmatpush1.bf16.msra.mxu1 %v736_v17 }
  0x63   :  { %379 = vmatprep.subr.bf16.mxu1 %v737_v18 }
  0x64   :  { %691 = vmatpush3.bf16.msra.mxu0 %v774_v45 }
  0x65   :  { %692 = vmatprep.subr.bf16.mxu0 %v775_v46 }
  0x66   :  { %380 = vmatpush1.bf16.msra.mxu1 %v739_v19 }
  0x67   :  { %381 = vmatprep.subr.bf16.mxu1 %v740_v20 }
  0x68   :  { %693 = vmatpush3.bf16.msra.mxu0 %v776_v47 }
  0x69   :  { %694 = vmatprep.subr.bf16.mxu0 %v777_v48 }
  0x6a   :  { %382 = vmatpush1.bf16.msra.mxu1 %v742_v21 }
  0x6b   :  { %383 = vmatprep.subr.bf16.mxu1 %v743_v22 }
  0x6c   :  { %695 = vmatpush3.bf16.msra.mxu0 %v778_v6 }
  0x6d   :  { %696 = vmatprep.subr.bf16.mxu0 %v779_v7 }
  0x6e   :  { %384 = vmatpush1.bf16.msra.mxu1 %v745_v23 }
  0x6f   :  { %385 = vmatprep.subr.bf16.mxu1 %v746_v24 }
  0x70   :  { %697 = vmatpush3.bf16.msra.mxu0 %v780_v8 }
  0x71   :  { %698 = vmatprep.subr.bf16.mxu0 %v781_v9 }
  0x72   :  { %386 = vmatpush1.bf16.msra.mxu1 %v748_v25 }
  0x73   :  { %387 = vmatprep.subr.bf16.mxu1 %v749_v26 }
  0x74   :  { %699 = vmatpush3.bf16.msra.mxu0 %v782_v10 }
  0x76   :  { %388 = vmatpush1.bf16.msra.mxu1 %v751_v27 }
  0x77   :  { %389 = vmatprep.subr.bf16.mxu1 %v752_v28 }
  0x7a   :  { %390 = vmatpush1.bf16.msra.mxu1 %v754_v29  ;;  %v658_v29 = vld [vmem:[%s1059_s6] ss:$0 sm:$0xff] }
  0x7b   :  { %391 = vmatprep.subr.bf16.mxu1 %v755_v30 }
  0x7e   :  { %392 = vmatpush1.bf16.msra.mxu1 %v757_v31 }
  0x7f   :  { %393 = vmatprep.subr.bf16.mxu1 %v758_v32 }
  0x82   :  { %394 = vmatpush1.bf16.msra.mxu1 %v760_v33 }
  0x83   :  { %395 = vmatprep.subr.bf16.mxu1 %v761_v34 }
  0x86   :  { %396 = vmatpush1.bf16.msra.mxu1 %v763_v35 }
  0x87   :  { %397 = vmatprep.subr.bf16.mxu1 %v764_v36 }
  0x8a   :  { %398 = vmatpush1.bf16.msra.mxu1 %v766_v37 }
 0x122   :  { %v148_v56 = vpop.f32.mrb[0].mxu0 }
 0x123   :  { %v149_v57 = vadd.f32 %v148_v56, %v93_v54  ;;  %v150_v58 = vpop.f32.mrb[1].mxu0 }
 0x124   :  { %v151_v59 = vadd.f32 %v150_v58, %v97_v55  ;;  %v152_v60 = vpop.f32.mrb[2].mxu0 }
 0x125   :  { %v153_v61 = vadd.f32 %v152_v60, %v93_v54  ;;  %v154_v62 = vpop.f32.mrb[3].mxu0  ;;  %v157_v0 = vmax.f32 %v149_v57, 0.0 }
 0x126   :  { %v155_v63 = vadd.f32 %v154_v62, %v97_v55  ;;  %v158_v2 = vmax.f32 %v151_v59, 0.0 }
 0x127   :  { %v159_v1 = vmax.f32 %v153_v61, 0.0 }
 0x128   :  { %v160_v3 = vmax.f32 %v155_v63, 0.0 }
 0x129   :  { %v161_v4 = vpack.c.bf16 %v159_v1, %v157_v0 }
 0x12a   :  { %v162_v5 = vpack.c.bf16 %v160_v3, %v158_v2 }
 0x12c   :  { %399 = vmatprep.mubr.bf16.mxu1 %v162_v5 }
 0x12d   :  { %400 = vmatmul.mubr.bf16.vlgmr.msra.gmra.mrb[0].mxu1 %v161_v4 }
 0x200   :  { %v401_v14 = vpop.f32.mrb[0].mxu1 }
 0x201   :  { %v402_v15 = vadd.f32 %v401_v14, %v200_v12  ;;  %v403_v16 = vpop.f32.mrb[1].mxu1 }
 0x202   :  { %v404_v17 = vadd.f32 %v403_v16, %v204_v13  ;;  %v405_v18 = vpop.f32.mrb[2].mxu1 }
 0x203   :  { %v406_v19 = vadd.f32 %v405_v18, %v200_v12  ;;  %v407_v20 = vpop.f32.mrb[3].mxu1  ;;  %v410_v22 = vmax.f32 %v402_v15, 0.0 }
 0x204   :  { %v408_v21 = vadd.f32 %v407_v20, %v204_v13  ;;  %v411_v24 = vmax.f32 %v404_v17, 0.0 }
 0x205   :  { %v412_v23 = vmax.f32 %v406_v19, 0.0 }
 0x206   :  { %v413_v25 = vmax.f32 %v408_v21, 0.0 }
 0x207   :  { %v414_v26 = vpack.c.bf16 %v412_v23, %v410_v22 }
 0x208   :  { %v415_v27 = vpack.c.bf16 %v413_v25, %v411_v24 }
 0x20a   :  { %583 = vmatprep.mubr.bf16.mxu0 %v415_v27 }
 0x20b   :  { %584 = vmatmul.mubr.bf16.vlgmr.msra.gmra.mrb[4].mxu0 %v414_v26 }
 0x2de   :  { %v700_v28 = vpop.f32.mrb[4].mxu0 }
 0x2df   :  { %v701_v30 = vpop.f32.mrb[5].mxu0 }
 0x2e0   :  { %v702_v31 = vadd.f32 %v701_v30, %v700_v28  ;;  %v703_v32 = vpop.f32.mrb[6].mxu0 }
 0x2e1   :  { %v704_v33 = vpop.f32.mrb[7].mxu0 }
 0x2e2   :  { %v586_v34 = vadd.f32 %v702_v31, %v658_v29  ;;  %v705_v35 = vadd.f32 %v704_v33, %v703_v32 }
 0x2e4   :  { %v589_v36 = vadd.f32 %v705_v35, %v658_v29  ;;  %783 = vtanh.f32 %v586_v34 }
 0x2e6   :  { %785 = vtanh.f32 %v589_v36 }
 0x2ee   :  { %v784_v37 = vpop.eup %783 }
 0x2f0   :  { %v786_v38 = vpop.eup %785 }
 0x2f1   :  { %v682_v39 = vpack.c.bf16 %v786_v38, %v784_v37 }
 0x2f3   :  { %683 = vst [vmem:[#allocation10] sm:$0xff] %v682_v39  }
 0x2f4   :  { %886 = shalt.err (!%p883_p8)
}
 0x2f5   :  { %s887_s11 = scalar_lea.hbm %s1060_s7, 128 }
 0x2f6   :  { %p888_p9 = scmp.ne.s32.totalorder %s1060_s7, %s887_s11  ;;  %p891_p10 = scmp.lt.u32.totalorder %s887_s11, %s1060_s7 }
 0x2f8   :  { %p893_p11 = pnand %p891_p10, %p888_p9 }
 0x2fa   :  { %896 = shalt.err (!%p893_p11)
}
 0x2fb   :  { %615 = dma.vmem_to_hbm [thread:$0]  %s610_s8, 128, %s1060_s7, [#allocation4], %s911_s3, %s911_s3, %s912_s13  }
 0x2fc   :  { %903 = dma.done.wait [#allocation4], 128  }
 0x2fd   :  { %904 = vsyncadd [#allocation4], 4294967168 }
 0x2fe   :  { %619 = vsyncpa [#allocation3], 1 }
 0x2ff   :  { %620 = vsyncpa [#allocation6], 1 }
 0x300   :  { %621 = vsyncpa [#allocation9], 1 }
 0x301   :  { %622 = vsyncpa [#allocation4], 1 }

</bundles_post_ra>
